<compile_context>
chip_gen: v7x
topology: tpu7x:2x2x1
jax: 0.10.0
libtpu: 0.0.40
codegen_flags: <defaults>
</compile_context>

<pallas_src>
import jax
import jax.numpy as jnp
from jax import lax
from jax.experimental import pallas as pl
from jax.experimental.pallas import tpu as pltpu  # noqa: F401  (TPU backend)

# ---------------- model hyper-params (small, consistent with the module) ----
B = 2          # batch
S = 8          # sequence length
BS = B * S     # folded rows
N_HEAD = 4
D_MODEL = 32
D_KEYS = 8
D_VALUES = 8
D_FF = 64
LN_EPS = 1e-5
SCALE = 1.0 / (D_KEYS ** 0.5)

# ---- packed "misc" slab layout (lane width = D_FF = 64) --------------------
ROW_W1 = 0                       # rows [0, 32)  : W1^T (D_MODEL, D_FF), full lanes
ROW_W2 = D_MODEL                 # rows [32, 96) : W2^T (D_FF, D_MODEL) in lanes [0,32)
ROW_VEC = D_MODEL + D_FF         # rows [96,102) : ln1_g, ln1_b, ln2_g, ln2_b, b1, b2
MISC_ROWS = ((ROW_VEC + 6 + 7) // 8) * 8   # 104 (padded to a multiple of 8 rows)

assert D_KEYS == D_VALUES, "packed attention-weight slab assumes d_keys == d_values"
assert (S & (S - 1)) == 0, "segment-mask shift trick assumes power-of-two seq len"
LOG2_S = S.bit_length() - 1


def _layer_norm(x, gamma, beta):
    # torch.nn.LayerNorm: biased variance over last dim, eps inside rsqrt.
    mu = jnp.mean(x, axis=-1, keepdims=True)
    var = jnp.mean((x - mu) ** 2, axis=-1, keepdims=True)
    return (x - mu) * jax.lax.rsqrt(var + LN_EPS) * gamma + beta


def encoder_cell_kernel(x_ref, w_attn_ref, misc_ref, out_ref):
    # x_ref:      (B*S, D_MODEL)                 activations, batch folded into rows
    # w_attn_ref: (4*N_HEAD, D_MODEL, D_KEYS)    stacked [Wq | Wk | Wv | Wo'] per head
    # misc_ref:   (MISC_ROWS, D_FF)              W1^T, W2^T, LN params, biases
    x = x_ref[...]                                            # (BS, D) f32

    # ---- Q/K/V projections: one head-batched einsum (no lane slices, no .T) ----
    w_qkv = w_attn_ref[0:3 * N_HEAD]                          # (3H, D, DK)
    x_b = jnp.broadcast_to(x[None], (3 * N_HEAD, BS, D_MODEL))
    qkv = jnp.einsum("hsd,hdk->hsk", x_b, w_qkv,
                     preferred_element_type=jnp.float32)      # (3H, BS, DK)
    q = qkv[0:N_HEAD]                                         # (H, BS, DK)
    k = qkv[N_HEAD:2 * N_HEAD]
    v = qkv[2 * N_HEAD:3 * N_HEAD]

    # ---- scaled dot-product attention over all B*S rows at once.
    #      Block-diagonal segment mask keeps different batch elements apart. ----
    s = jnp.einsum("hsd,htd->hst", q, k,
                   preferred_element_type=jnp.float32) * SCALE     # (H, BS, BS)
    row_seg = jnp.right_shift(
        lax.broadcasted_iota(jnp.int32, (BS, BS), 0), LOG2_S)      # row batch id
    col_seg = jnp.right_shift(
        lax.broadcasted_iota(jnp.int32, (BS, BS), 1), LOG2_S)      # col batch id
    seg_mask = jnp.where(row_seg == col_seg, 0.0, -1e30).astype(jnp.float32)
    s = s + seg_mask[None]

    m = jnp.max(s, axis=-1, keepdims=True)
    p = jnp.exp(s - m)
    denom = jnp.sum(p, axis=-1, keepdims=True)
    p = p * pl.reciprocal(denom, approx=True)                 # EUP reciprocal
    ctx = jnp.einsum("hst,htd->hsd", p, v,
                     preferred_element_type=jnp.float32)      # (H, BS, DV)

    # ---- output projection: per-head matmul + head-sum == concat(heads) @ Wo^T ----
    wo = w_attn_ref[3 * N_HEAD:4 * N_HEAD]                    # (H, D, DV)
    attn_h = jnp.einsum("hsd,hmd->hsm", ctx, wo,
                        preferred_element_type=jnp.float32)   # (H, BS, D)
    attn = attn_h[0]
    for h in range(1, N_HEAD):      # static unroll: just N_HEAD-1 vector adds
        attn = attn + attn_h[h]

    # ---- packed FFN / LayerNorm parameters (every slice starts at lane 0) ----
    w1 = misc_ref[ROW_W1:ROW_W1 + D_MODEL, :]                 # (D, D_FF)
    w2 = misc_ref[ROW_W2:ROW_W2 + D_FF, 0:D_MODEL]            # (D_FF, D)
    ln1_g = misc_ref[ROW_VEC + 0:ROW_VEC + 1, 0:D_MODEL]      # (1, D)
    ln1_b = misc_ref[ROW_VEC + 1:ROW_VEC + 2, 0:D_MODEL]
    ln2_g = misc_ref[ROW_VEC + 2:ROW_VEC + 3, 0:D_MODEL]
    ln2_b = misc_ref[ROW_VEC + 3:ROW_VEC + 4, 0:D_MODEL]
    b1 = misc_ref[ROW_VEC + 4:ROW_VEC + 5, :]                 # (1, D_FF)
    b2 = misc_ref[ROW_VEC + 5:ROW_VEC + 6, 0:D_MODEL]         # (1, D)

    # ---- post-norm encoder cell (dropout = identity at inference) ----
    z2 = _layer_norm(x + attn, ln1_g, ln1_b)                  # (BS, D)
    h1 = jnp.maximum(
        jnp.dot(z2, w1, preferred_element_type=jnp.float32) + b1, 0.0)
    z3 = jnp.dot(h1, w2, preferred_element_type=jnp.float32) + b2
    y = _layer_norm(z2 + z3, ln2_g, ln2_b)                    # (BS, D)

    # Last dim 32 (<128) -> masked partial stores; accepted (2 KiB output).
    out_ref[...] = y


# ---------------- wrapper: pack params, single pallas_call (no grid) --------
def _pack_params(params):
    (wq_t, wk_t, wv_t, wo_t, ln1_g, ln1_b,
     w1_t, b1, w2_t, b2, ln2_g, ln2_b) = params

    # Attention weights reshaped wrapper-side (free) so the kernel can run
    # head-batched einsums with zero in-kernel lane reshapes:
    #   wq3/wk3/wv3[h, d_model, d_head],  wo3[h, d_model, d_head]
    wq3 = wq_t.reshape(D_MODEL, N_HEAD, D_KEYS).transpose(1, 0, 2)
    wk3 = wk_t.reshape(D_MODEL, N_HEAD, D_KEYS).transpose(1, 0, 2)
    wv3 = wv_t.reshape(D_MODEL, N_HEAD, D_VALUES).transpose(1, 0, 2)
    wo3 = wo_t.reshape(N_HEAD, D_VALUES, D_MODEL).transpose(0, 2, 1)
    w_attn = jnp.concatenate([wq3, wk3, wv3, wo3], axis=0)    # (4H, D, DK)

    # FFN weights + LayerNorm/bias vectors packed into one (104, D_FF) slab.
    misc = jnp.zeros((MISC_ROWS, D_FF), jnp.float32)
    misc = misc.at[ROW_W1:ROW_W1 + D_MODEL, :].set(w1_t)
    misc = misc.at[ROW_W2:ROW_W2 + D_FF, 0:D_MODEL].set(w2_t)
    misc = misc.at[ROW_VEC + 0, 0:D_MODEL].set(ln1_g.reshape(-1))
    misc = misc.at[ROW_VEC + 1, 0:D_MODEL].set(ln1_b.reshape(-1))
    misc = misc.at[ROW_VEC + 2, 0:D_MODEL].set(ln2_g.reshape(-1))
    misc = misc.at[ROW_VEC + 3, 0:D_MODEL].set(ln2_b.reshape(-1))
    misc = misc.at[ROW_VEC + 4, :].set(b1.reshape(-1))
    misc = misc.at[ROW_VEC + 5, 0:D_MODEL].set(b2.reshape(-1))
    return w_attn, misc


def transformer_encoder_cell(x, params):
    w_attn, misc = _pack_params(params)
    x_flat = x.reshape(B * S, D_MODEL)      # fold batch into rows
    y_flat = pl.pallas_call(
        encoder_cell_kernel,
        out_shape=jax.ShapeDtypeStruct((B * S, D_MODEL), jnp.float32),
        # No grid / BlockSpecs: a single invocation with every (tiny) operand
        # mapped whole into VMEM — one grid step instead of B, and 3 input DMAs
        # instead of 13.
    )(x_flat, w_attn, misc)
    return y_flat.reshape(B, S, D_MODEL)


# ---------------- deterministic parameter init (mirrors __init__) -----------
def xavier_uniform(key, out_features, in_features):
    bound = (6.0 / (in_features + out_features)) ** 0.5
    w = jax.random.uniform(key, (out_features, in_features),
                           minval=-bound, maxval=bound, dtype=jnp.float32)
    return w.T  # pass transposed: (in_features, out_features)


def linear_bias(key, in_features, out_features):
    bound = 1.0 / (in_features ** 0.5)
    return jax.random.uniform(key, (1, out_features),
                              minval=-bound, maxval=bound, dtype=jnp.float32)


def make_params(key):
    ks = jax.random.split(key, 8)
    wq_t = xavier_uniform(ks[0], N_HEAD * D_KEYS, D_MODEL)
    wk_t = xavier_uniform(ks[1], N_HEAD * D_KEYS, D_MODEL)
    wv_t = xavier_uniform(ks[2], N_HEAD * D_VALUES, D_MODEL)
    wo_t = xavier_uniform(ks[3], D_MODEL, N_HEAD * D_VALUES)
    w1_t = xavier_uniform(ks[4], D_FF, D_MODEL)
    b1 = linear_bias(ks[5], D_MODEL, D_FF)
    w2_t = xavier_uniform(ks[6], D_MODEL, D_FF)
    b2 = linear_bias(ks[7], D_FF, D_MODEL)
    ln1_g = jnp.ones((1, D_MODEL), jnp.float32)
    ln1_b = jnp.zeros((1, D_MODEL), jnp.float32)
    ln2_g = jnp.ones((1, D_MODEL), jnp.float32)
    ln2_b = jnp.zeros((1, D_MODEL), jnp.float32)
    return (wq_t, wk_t, wv_t, wo_t, ln1_g, ln1_b,
            w1_t, b1, w2_t, b2, ln2_g, ln2_b)


# ---------------- pure-JAX reference (for sanity check) ---------------------
def reference(x, params):
    (wq_t, wk_t, wv_t, wo_t, ln1_g, ln1_b,
     w1_t, b1, w2_t, b2, ln2_g, ln2_b) = params
    q = (x @ wq_t).reshape(B, S, N_HEAD, D_KEYS).transpose(0, 2, 1, 3)
    k = (x @ wk_t).reshape(B, S, N_HEAD, D_KEYS).transpose(0, 2, 3, 1)
    v = (x @ wv_t).reshape(B, S, N_HEAD, D_VALUES).transpose(0, 2, 1, 3)
    a = jnp.matmul(q, k) * SCALE
    a = jax.nn.softmax(a, axis=-1)
    ctx = jnp.matmul(a, v).transpose(0, 2, 1, 3).reshape(B, S, N_HEAD * D_VALUES)
    attn = ctx @ wo_t
    z2 = _layer_norm(x + attn, ln1_g, ln1_b)
    z3 = jnp.maximum(z2 @ w1_t + b1, 0.0) @ w2_t + b2
    return _layer_norm(z2 + z3, ln2_g, ln2_b)


if __name__ == "__main__":
    key = jax.random.PRNGKey(0)
    k_x, k_p = jax.random.split(key)
    x = jax.random.normal(k_x, (B, S, D_MODEL), dtype=jnp.float32)
    params = make_params(k_p)

    y = transformer_encoder_cell(x, params)
    y = jax.block_until_ready(y)

    y_ref = reference(x, params)
    # Tolerance slightly loosened vs exact f32 because the softmax denominator
    # uses the EUP approximate reciprocal (pl.reciprocal(..., approx=True)).
    assert jnp.allclose(y, y_ref, atol=2e-3, rtol=2e-3), "mismatch vs reference"

    # TODO(synk): padding_mask / mask branches of MultiHeadAttn not exercised
    # (forward is called with None here), so they are not implemented in-kernel.
    print("KERNEL_OK")
</pallas_src>

<mosaic_0001>
module attributes {stable_mosaic.version = 11 : i64} {
  func.func @encoder_cell_kernel(%arg0: memref<16x32xf32, #tpu.memory_space<vmem>>, %arg1: memref<16x32x8xf32, #tpu.memory_space<vmem>>, %arg2: memref<104x64xf32, #tpu.memory_space<vmem>>, %arg3: memref<16x32xf32, #tpu.memory_space<vmem>>) attributes {dimension_semantics = [], scalar_prefetch = 0 : i64, scratch_operands = 0 : i64, tpu.core_type = #tpu.core_type<tc>} {
    %c0 = arith.constant 0 : index
    %c0_0 = arith.constant 0 : index
    %0 = vector.load %arg0[%c0, %c0_0] : memref<16x32xf32, #tpu.memory_space<vmem>>, vector<16x32xf32>
    %c0_1 = arith.constant 0 : index
    %c0_2 = arith.constant 0 : index
    %c0_3 = arith.constant 0 : index
    %1 = vector.load %arg1[%c0_1, %c0_2, %c0_3] : memref<16x32x8xf32, #tpu.memory_space<vmem>>, vector<12x32x8xf32>
    %2 = vector.shape_cast %0 : vector<16x32xf32> to vector<1x16x32xf32>
    %3 = vector.shape_cast %2 : vector<1x16x32xf32> to vector<1x16x32xf32>
    %4 = vector.broadcast %3 : vector<1x16x32xf32> to vector<12x16x32xf32>
    "tpu.trace_start"() <{level = 10 : i32, message = "hsd,hdk->hsk"}> : () -> ()
    %cst = arith.constant dense<0.000000e+00> : vector<12x16x8xf32>
    %5 = tpu.matmul %4, %1, %cst {dimension_numbers = #tpu.dot_dimension_numbers<[2], [1], [1], [2], [0, 0, 0, 1, 1, 2], [0], [0]>} : vector<12x16x32xf32>, vector<12x32x8xf32>, vector<12x16x8xf32> -> vector<12x16x8xf32>
    "tpu.trace_stop"() : () -> ()
    %6 = vector.extract_strided_slice %5 {offsets = [0, 0, 0], sizes = [4, 16, 8], strides = [1, 1, 1]} : vector<12x16x8xf32> to vector<4x16x8xf32>
    %7 = vector.extract_strided_slice %5 {offsets = [4, 0, 0], sizes = [4, 16, 8], strides = [1, 1, 1]} : vector<12x16x8xf32> to vector<4x16x8xf32>
    %8 = vector.extract_strided_slice %5 {offsets = [8, 0, 0], sizes = [4, 16, 8], strides = [1, 1, 1]} : vector<12x16x8xf32> to vector<4x16x8xf32>
    "tpu.trace_start"() <{level = 10 : i32, message = "hsd,htd->hst"}> : () -> ()
    %cst_4 = arith.constant dense<0.000000e+00> : vector<4x16x16xf32>
    %9 = tpu.matmul %6, %7, %cst_4 {dimension_numbers = #tpu.dot_dimension_numbers<[2], [2], [1], [1], [0, 0, 0, 1, 1, 1], [0], [0]>} : vector<4x16x8xf32>, vector<4x16x8xf32>, vector<4x16x16xf32> -> vector<4x16x16xf32>
    "tpu.trace_stop"() : () -> ()
    %cst_5 = arith.constant 0.353553385 : f32
    %10 = vector.broadcast %cst_5 : f32 to vector<4x16x16xf32>
    %11 = arith.mulf %9, %10 : vector<4x16x16xf32>
    %12 = tpu.iota {dimensions = array<i32: 0>} : vector<16x16xi32>
    %c3_i32 = arith.constant 3 : i32
    %13 = vector.broadcast %c3_i32 : i32 to vector<16x16xi32>
    %14 = arith.shrsi %12, %13 : vector<16x16xi32>
    %15 = tpu.iota {dimensions = array<i32: 1>} : vector<16x16xi32>
    %c3_i32_6 = arith.constant 3 : i32
    %16 = vector.broadcast %c3_i32_6 : i32 to vector<16x16xi32>
    %17 = arith.shrsi %15, %16 : vector<16x16xi32>
    %18 = arith.cmpi eq, %14, %17 : vector<16x16xi32>
    %cst_7 = arith.constant 0.000000e+00 : f32
    %cst_8 = arith.constant -1.000000e+30 : f32
    %19 = vector.broadcast %cst_7 : f32 to vector<16x16xf32>
    %20 = vector.broadcast %cst_8 : f32 to vector<16x16xf32>
    %21 = arith.select %18, %19, %20 : vector<16x16xi1>, vector<16x16xf32>
    %22 = vector.shape_cast %21 : vector<16x16xf32> to vector<1x16x16xf32>
    %23 = vector.broadcast %22 : vector<1x16x16xf32> to vector<4x16x16xf32>
    %24 = arith.addf %11, %23 : vector<4x16x16xf32>
    %cst_9 = arith.constant dense<0xFF800000> : vector<4x16xf32>
    %25 = vector.multi_reduction <maximumf>, %24, %cst_9 [2] : vector<4x16x16xf32> to vector<4x16xf32>
    %26 = vector.shape_cast %25 : vector<4x16xf32> to vector<4x16x1xf32>
    %27 = vector.broadcast %26 : vector<4x16x1xf32> to vector<4x16x16xf32>
    %28 = arith.subf %24, %27 : vector<4x16x16xf32>
    %29 = math.exp %28 : vector<4x16x16xf32>
    %cst_10 = arith.constant dense<0.000000e+00> : vector<4x16xf32>
    %30 = vector.multi_reduction <add>, %29, %cst_10 [2] : vector<4x16x16xf32> to vector<4x16xf32>
    %31 = vector.shape_cast %30 : vector<4x16xf32> to vector<4x16x1xf32>
    %32 = tpu.reciprocal %31 {approx = true} : vector<4x16x1xf32> -> vector<4x16x1xf32>
    %33 = vector.broadcast %32 : vector<4x16x1xf32> to vector<4x16x16xf32>
    %34 = arith.mulf %29, %33 : vector<4x16x16xf32>
    "tpu.trace_start"() <{level = 10 : i32, message = "hst,htd->hsd"}> : () -> ()
    %cst_11 = arith.constant dense<0.000000e+00> : vector<4x16x8xf32>
    %35 = tpu.matmul %34, %8, %cst_11 {dimension_numbers = #tpu.dot_dimension_numbers<[2], [1], [1], [2], [0, 0, 0, 1, 1, 2], [0], [0]>} : vector<4x16x16xf32>, vector<4x16x8xf32>, vector<4x16x8xf32> -> vector<4x16x8xf32>
    "tpu.trace_stop"() : () -> ()
    %c12 = arith.constant 12 : index
    %c0_12 = arith.constant 0 : index
    %c0_13 = arith.constant 0 : index
    %36 = vector.load %arg1[%c12, %c0_12, %c0_13] : memref<16x32x8xf32, #tpu.memory_space<vmem>>, vector<4x32x8xf32>
    "tpu.trace_start"() <{level = 10 : i32, message = "hsd,hmd->hsm"}> : () -> ()
    %cst_14 = arith.constant dense<0.000000e+00> : vector<4x16x32xf32>
    %37 = tpu.matmul %35, %36, %cst_14 {dimension_numbers = #tpu.dot_dimension_numbers<[2], [2], [1], [1], [0, 0, 0, 1, 1, 1], [0], [0]>} : vector<4x16x8xf32>, vector<4x32x8xf32>, vector<4x16x32xf32> -> vector<4x16x32xf32>
    "tpu.trace_stop"() : () -> ()
    %38 = vector.extract_strided_slice %37 {offsets = [0, 0, 0], sizes = [1, 16, 32], strides = [1, 1, 1]} : vector<4x16x32xf32> to vector<1x16x32xf32>
    %39 = vector.shape_cast %38 : vector<1x16x32xf32> to vector<16x32xf32>
    %40 = vector.extract_strided_slice %37 {offsets = [1, 0, 0], sizes = [1, 16, 32], strides = [1, 1, 1]} : vector<4x16x32xf32> to vector<1x16x32xf32>
    %41 = vector.shape_cast %40 : vector<1x16x32xf32> to vector<16x32xf32>
    %42 = arith.addf %39, %41 : vector<16x32xf32>
    %43 = vector.extract_strided_slice %37 {offsets = [2, 0, 0], sizes = [1, 16, 32], strides = [1, 1, 1]} : vector<4x16x32xf32> to vector<1x16x32xf32>
    %44 = vector.shape_cast %43 : vector<1x16x32xf32> to vector<16x32xf32>
    %45 = arith.addf %42, %44 : vector<16x32xf32>
    %46 = vector.extract_strided_slice %37 {offsets = [3, 0, 0], sizes = [1, 16, 32], strides = [1, 1, 1]} : vector<4x16x32xf32> to vector<1x16x32xf32>
    %47 = vector.shape_cast %46 : vector<1x16x32xf32> to vector<16x32xf32>
    %48 = arith.addf %45, %47 : vector<16x32xf32>
    %c0_15 = arith.constant 0 : index
    %c0_16 = arith.constant 0 : index
    %49 = vector.load %arg2[%c0_15, %c0_16] : memref<104x64xf32, #tpu.memory_space<vmem>>, vector<32x64xf32>
    %c32 = arith.constant 32 : index
    %c0_17 = arith.constant 0 : index
    %50 = vector.load %arg2[%c32, %c0_17] : memref<104x64xf32, #tpu.memory_space<vmem>>, vector<64x32xf32>
    %c96 = arith.constant 96 : index
    %c0_18 = arith.constant 0 : index
    %51 = vector.load %arg2[%c96, %c0_18] : memref<104x64xf32, #tpu.memory_space<vmem>>, vector<1x32xf32>
    %c97 = arith.constant 97 : index
    %c0_19 = arith.constant 0 : index
    %52 = vector.load %arg2[%c97, %c0_19] : memref<104x64xf32, #tpu.memory_space<vmem>>, vector<1x32xf32>
    %c98 = arith.constant 98 : index
    %c0_20 = arith.constant 0 : index
    %53 = vector.load %arg2[%c98, %c0_20] : memref<104x64xf32, #tpu.memory_space<vmem>>, vector<1x32xf32>
    %c99 = arith.constant 99 : index
    %c0_21 = arith.constant 0 : index
    %54 = vector.load %arg2[%c99, %c0_21] : memref<104x64xf32, #tpu.memory_space<vmem>>, vector<1x32xf32>
    %c100 = arith.constant 100 : index
    %c0_22 = arith.constant 0 : index
    %55 = vector.load %arg2[%c100, %c0_22] : memref<104x64xf32, #tpu.memory_space<vmem>>, vector<1x64xf32>
    %c101 = arith.constant 101 : index
    %c0_23 = arith.constant 0 : index
    %56 = vector.load %arg2[%c101, %c0_23] : memref<104x64xf32, #tpu.memory_space<vmem>>, vector<1x32xf32>
    %57 = arith.addf %0, %48 : vector<16x32xf32>
    %cst_24 = arith.constant dense<0.000000e+00> : vector<16xf32>
    %58 = vector.multi_reduction <add>, %57, %cst_24 [1] : vector<16x32xf32> to vector<16xf32>
    %59 = vector.shape_cast %58 : vector<16xf32> to vector<16x1xf32>
    %cst_25 = arith.constant 3.200000e+01 : f32
    %60 = vector.broadcast %cst_25 : f32 to vector<16x1xf32>
    %61 = arith.divf %59, %60 : vector<16x1xf32>
    %62 = vector.broadcast %61 : vector<16x1xf32> to vector<16x32xf32>
    %63 = arith.subf %57, %62 : vector<16x32xf32>
    %64 = arith.mulf %63, %63 : vector<16x32xf32>
    %cst_26 = arith.constant dense<0.000000e+00> : vector<16xf32>
    %65 = vector.multi_reduction <add>, %64, %cst_26 [1] : vector<16x32xf32> to vector<16xf32>
    %66 = vector.shape_cast %65 : vector<16xf32> to vector<16x1xf32>
    %cst_27 = arith.constant 3.200000e+01 : f32
    %67 = vector.broadcast %cst_27 : f32 to vector<16x1xf32>
    %68 = arith.divf %66, %67 : vector<16x1xf32>
    %69 = vector.broadcast %61 : vector<16x1xf32> to vector<16x32xf32>
    %70 = arith.subf %57, %69 : vector<16x32xf32>
    %cst_28 = arith.constant 9.99999974E-6 : f32
    %71 = vector.broadcast %cst_28 : f32 to vector<16x1xf32>
    %72 = arith.addf %68, %71 : vector<16x1xf32>
    %73 = math.rsqrt %72 : vector<16x1xf32>
    %74 = vector.broadcast %73 : vector<16x1xf32> to vector<16x32xf32>
    %75 = arith.mulf %70, %74 : vector<16x32xf32>
    %76 = vector.broadcast %51 : vector<1x32xf32> to vector<16x32xf32>
    %77 = arith.mulf %75, %76 : vector<16x32xf32>
    %78 = vector.broadcast %52 : vector<1x32xf32> to vector<16x32xf32>
    %79 = arith.addf %77, %78 : vector<16x32xf32>
    %cst_29 = arith.constant dense<0.000000e+00> : vector<16x64xf32>
    %80 = tpu.matmul %79, %49, %cst_29 {dimension_numbers = #tpu.dot_dimension_numbers<[1], [0], [0], [1], [0, 0, 1, 1], [], []>} : vector<16x32xf32>, vector<32x64xf32>, vector<16x64xf32> -> vector<16x64xf32>
    %81 = vector.broadcast %55 : vector<1x64xf32> to vector<16x64xf32>
    %82 = arith.addf %80, %81 : vector<16x64xf32>
    %cst_30 = arith.constant 0.000000e+00 : f32
    %83 = vector.broadcast %cst_30 : f32 to vector<16x64xf32>
    %84 = arith.maximumf %82, %83 : vector<16x64xf32>
    %cst_31 = arith.constant dense<0.000000e+00> : vector<16x32xf32>
    %85 = tpu.matmul %84, %50, %cst_31 {dimension_numbers = #tpu.dot_dimension_numbers<[1], [0], [0], [1], [0, 0, 1, 1], [], []>} : vector<16x64xf32>, vector<64x32xf32>, vector<16x32xf32> -> vector<16x32xf32>
    %86 = vector.broadcast %56 : vector<1x32xf32> to vector<16x32xf32>
    %87 = arith.addf %85, %86 : vector<16x32xf32>
    %88 = arith.addf %79, %87 : vector<16x32xf32>
    %cst_32 = arith.constant dense<0.000000e+00> : vector<16xf32>
    %89 = vector.multi_reduction <add>, %88, %cst_32 [1] : vector<16x32xf32> to vector<16xf32>
    %90 = vector.shape_cast %89 : vector<16xf32> to vector<16x1xf32>
    %cst_33 = arith.constant 3.200000e+01 : f32
    %91 = vector.broadcast %cst_33 : f32 to vector<16x1xf32>
    %92 = arith.divf %90, %91 : vector<16x1xf32>
    %93 = vector.broadcast %92 : vector<16x1xf32> to vector<16x32xf32>
    %94 = arith.subf %88, %93 : vector<16x32xf32>
    %95 = arith.mulf %94, %94 : vector<16x32xf32>
    %cst_34 = arith.constant dense<0.000000e+00> : vector<16xf32>
    %96 = vector.multi_reduction <add>, %95, %cst_34 [1] : vector<16x32xf32> to vector<16xf32>
    %97 = vector.shape_cast %96 : vector<16xf32> to vector<16x1xf32>
    %cst_35 = arith.constant 3.200000e+01 : f32
    %98 = vector.broadcast %cst_35 : f32 to vector<16x1xf32>
    %99 = arith.divf %97, %98 : vector<16x1xf32>
    %100 = vector.broadcast %92 : vector<16x1xf32> to vector<16x32xf32>
    %101 = arith.subf %88, %100 : vector<16x32xf32>
    %cst_36 = arith.constant 9.99999974E-6 : f32
    %102 = vector.broadcast %cst_36 : f32 to vector<16x1xf32>
    %103 = arith.addf %99, %102 : vector<16x1xf32>
    %104 = math.rsqrt %103 : vector<16x1xf32>
    %105 = vector.broadcast %104 : vector<16x1xf32> to vector<16x32xf32>
    %106 = arith.mulf %101, %105 : vector<16x32xf32>
    %107 = vector.broadcast %53 : vector<1x32xf32> to vector<16x32xf32>
    %108 = arith.mulf %106, %107 : vector<16x32xf32>
    %109 = vector.broadcast %54 : vector<1x32xf32> to vector<16x32xf32>
    %110 = arith.addf %108, %109 : vector<16x32xf32>
    %c0_37 = arith.constant 0 : index
    %c0_38 = arith.constant 0 : index
    %111 = vector.load %arg3[%c0_37, %c0_38] : memref<16x32xf32, #tpu.memory_space<vmem>>, vector<16x32xf32>
    tpu.vector_store %arg3[%c0_37, %c0_38], %110 {strides = array<i32>} : memref<16x32xf32, #tpu.memory_space<vmem>>, vector<16x32xf32>,
    return
  }
}

</mosaic_0001>

<bundles_post_ra>
// kernel: tpu_custom_call.1
= control target key start
LH: loop header
LB: loop body
LE: loop exit
PB: predicated region body
PF: predicated region fallthrough
CT: control target
= control target key end

     0   :  { %vm65_vm0 = vcmask 261120   ;;  %s3689_s0 = inlined_call_operand.vmem [shape: f32[16,32], index: 0, kind: input, shape index: {}]   ;;  %s3690_s1 = inlined_call_operand.vmem [shape: f32[16,32,8], index: 1, kind: input, shape index: {}]   ;;  %s3691_s2 = inlined_call_operand.vmem [shape: f32[104,64], index: 2, kind: input, shape index: {}]   ;;  %s3692_s3 = inlined_call_operand.hbm [shape: f32[16,32], index: 3, kind: output, shape index: {}]  }
   0x1   :  { %v17_v0 = vld [vmem:[%s3690_s1] sm:$0xff]  ;;  %v18_v1 = vld [vmem:[%s3690_s1 + $0x8] sm:$0xff]  ;;  %v19_v5 = vld [vmem:[%s3690_s1 + $0x10] sm:$0xff] }
   0x2   :  { %v21_v2 = vld [vmem:[%s3690_s1 + $0x20] sm:$0xff]  ;;  %v2951_v3 = vpack.c.bf16 %v18_v1, %v17_v0  ;;  %v22_v4 = vld [vmem:[%s3690_s1 + $0x28] sm:$0xff]  ;;  %v20_v6 = vld [vmem:[%s3690_s1 + $0x18] sm:$0xff] }
   0x3   :  { %v2959_v7 = vpack.c.bf16 %v22_v4, %v21_v2  ;;  %v2955_v8 = vpack.c.bf16 %v20_v6, %v19_v5  ;;  %v23_v9 = vld [vmem:[%s3690_s1 + $0x30] sm:$0xff]  ;;  %v24_v10 = vld [vmem:[%s3690_s1 + $0x38] sm:$0xff]  ;;  %v3284_v11 = vld [vmem:[%s3689_s0] sm:$0xff] }
   0x4   :  { %2952 = vmatprep.subr.bf16.mxu0 %v2951_v3  ;;  %v2963_v12 = vpack.c.bf16 %v24_v10, %v23_v9  ;;  %2697 = vmatprep.mubr.msk.f32.mxu0 %vm65_vm0, %v3284_v11  ;;  %v25_v13 = vld [vmem:[%s3690_s1 + $0x40] sm:$0xff]  ;;  %v26_v14 = vld [vmem:[%s3690_s1 + $0x48] sm:$0xff]  ;;  %v27_v19 = vld [vmem:[%s3690_s1 + $0x50] sm:$0xff] }
   0x5   :  { %2960 = vmatprep.subr.bf16.mxu1 %v2959_v7  ;;  %2954 = vmatpush3.bf16.msra.mxu0 %v2951_v3  ;;  %v29_v15 = vld [vmem:[%s3690_s1 + $0x60] sm:$0xff]  ;;  %v30_v16 = vld [vmem:[%s3690_s1 + $0x68] sm:$0xff]  ;;  %v2967_v17 = vpack.c.bf16 %v26_v14, %v25_v13  ;;  %v28_v20 = vld [vmem:[%s3690_s1 + $0x58] sm:$0xff] }
   0x6   :  { %2962 = vmatpush3.bf16.msra.mxu1 %v2959_v7  ;;  %2956 = vmatprep.subr.bf16.mxu0 %v2955_v8  ;;  %v2975_v18 = vpack.c.bf16 %v30_v16, %v29_v15  ;;  %v31_v21 = vld [vmem:[%s3690_s1 + $0x70] sm:$0xff]  ;;  %v32_v22 = vld [vmem:[%s3690_s1 + $0x78] sm:$0xff]  ;;  %v3317_v23 = vld [vmem:[%s3689_s0 + $0x8] sm:$0xff]  ;;  %v2971_v24 = vpack.c.bf16 %v28_v20, %v27_v19 }
   0x7   :  { %2964 = vmatprep.subr.bf16.mxu1 %v2963_v12  ;;  %2708 = vmatprep.mubr.msk.f32.mxu1 %vm65_vm0, %v3284_v11  ;;  %v2979_v25 = vpack.c.bf16 %v32_v22, %v31_v21  ;;  %v33_v26 = vld [vmem:[%s3690_s1 + $0x80] sm:$0xff]  ;;  %v34_v27 = vld [vmem:[%s3690_s1 + $0x88] sm:$0xff]  ;;  %v35_v32 = vld [vmem:[%s3690_s1 + $0x90] sm:$0xff] }
   0x8   :  { %v37_v28 = vld [vmem:[%s3690_s1 + $0xa0] sm:$0xff]  ;;  %v38_v29 = vld [vmem:[%s3690_s1 + $0xa8] sm:$0xff]  ;;  %v2983_v30 = vpack.c.bf16 %v34_v27, %v33_v26  ;;  %v36_v33 = vld [vmem:[%s3690_s1 + $0x98] sm:$0xff] }
   0x9   :  { %2958 = vmatpush3.bf16.msra.mxu0 %v2955_v8  ;;  %v2991_v31 = vpack.c.bf16 %v38_v29, %v37_v28  ;;  %v39_v34 = vld [vmem:[%s3690_s1 + $0xb0] sm:$0xff]  ;;  %v40_v35 = vld [vmem:[%s3690_s1 + $0xb8] sm:$0xff] }
   0xa   :  { %2966 = vmatpush3.bf16.msra.mxu1 %v2963_v12  ;;  %2968 = vmatprep.subr.bf16.mxu0 %v2967_v17 }
   0xb   :  { %2976 = vmatprep.subr.bf16.mxu1 %v2975_v18 }
   0xc   :  { %2698 = vmatmul.mubr.msk.f32.vlgmr.msra.gmra.mrb[0].mxu0 %vm65_vm0, %v3317_v23 }
   0xd   :  { %2709 = vmatmul.mubr.msk.f32.vlgmr.msra.gmra.mrb[0].mxu1 %vm65_vm0, %v3317_v23  ;;  %2970 = vmatpush3.bf16.msra.mxu0 %v2967_v17 }
   0xe   :  { %2978 = vmatpush3.bf16.msra.mxu1 %v2975_v18  ;;  %2972 = vmatprep.subr.bf16.mxu0 %v2971_v24 }
   0xf   :  { %2980 = vmatprep.subr.bf16.mxu1 %v2979_v25  ;;  %2719 = vmatprep.mubr.msk.f32.mxu0 %vm65_vm0, %v3284_v11 }
  0x10   :  { %2730 = vmatprep.mubr.msk.f32.mxu1 %vm65_vm0, %v3284_v11 }
  0x11   :  { %2974 = vmatpush3.bf16.msra.mxu0 %v2971_v24 }
  0x12   :  { %8 = vsyncpa [#allocation3], 0  ;;  %2982 = vmatpush3.bf16.msra.mxu1 %v2979_v25  ;;  %2984 = vmatprep.subr.bf16.mxu0 %v2983_v30  ;;  %v2987_v36 = vpack.c.bf16 %v36_v33, %v35_v32  ;;  %v2995_v37 = vpack.c.bf16 %v40_v35, %v39_v34  ;;  %v41_v38 = vld [vmem:[%s3690_s1 + $0xc0] sm:$0xff]  ;;  %v42_v39 = vld [vmem:[%s3690_s1 + $0xc8] sm:$0xff]  ;;  %vm972_vm1 = vcmask 64512   ;;  %vm1349_vm5 = vcmask 130048  }
  0x13   :  { %2992 = vmatprep.subr.bf16.mxu1 %v2991_v31  ;;  %v45_v40 = vld [vmem:[%s3690_s1 + $0xe0] sm:$0xff]  ;;  %v46_v41 = vld [vmem:[%s3690_s1 + $0xe8] sm:$0xff]  ;;  %v2999_v42 = vpack.c.bf16 %v42_v39, %v41_v38  ;;  %v43_v44 = vld [vmem:[%s3690_s1 + $0xd0] sm:$0xff]  ;;  %vm2307_vm6 = vcmask 523264   ;;  %s3234_s11 = smov [#allocation2]  }
  0x14   :  { %2720 = vmatmul.mubr.msk.f32.vlgmr.msra.gmra.mrb[2].mxu0 %vm65_vm0, %v3317_v23  ;;  %v3007_v43 = vpack.c.bf16 %v46_v41, %v45_v40  ;;  %v44_v45 = vld [vmem:[%s3690_s1 + $0xd8] sm:$0xff]  ;;  %v47_v46 = vld [vmem:[%s3690_s1 + $0xf0] sm:$0xff]  ;;  %v49_v50 = vld [vmem:[%s3690_s1 + $0x100] sm:$0xff]  ;;  %s2436_s12 = sshll.u32 %s3234_s11, 4  ;;  %s2437_s12 = int_to_ptr.vmem [resolvable:$true] %s2436_s12 }
  0x15   :  { %2731 = vmatmul.mubr.msk.f32.vlgmr.msra.gmra.mrb[2].mxu1 %vm65_vm0, %v3317_v23  ;;  %2986 = vmatpush3.bf16.msra.mxu0 %v2983_v30  ;;  %v48_v47 = vld [vmem:[%s3690_s1 + $0xf8] sm:$0xff]  ;;  %v3003_v48 = vpack.c.bf16 %v44_v45, %v43_v44  ;;  %v50_v51 = vld [vmem:[%s3690_s1 + $0x108] sm:$0xff]  ;;  %v53_v52 = vld [vmem:[%s3690_s1 + $0x120] sm:$0xff]  ;;  %v1329_v45 = vlaneseq  ;;  %s3209_s13 = scalar_lea.vmem %s2437_s12, 256  ;;  %p3214_p1 = scmp.lt.s32.totalorder %s2437_s12, %s2437_s12 }
  0x16   :  { %2994 = vmatpush3.bf16.msra.mxu1 %v2991_v31  ;;  %2988 = vmatprep.subr.bf16.mxu0 %v2987_v36  ;;  %v3011_v49 = vpack.c.bf16 %v48_v47, %v47_v46  ;;  %v54_v53 = vld [vmem:[%s3690_s1 + $0x128] sm:$0xff]  ;;  %v3015_v54 = vpack.c.bf16 %v50_v51, %v49_v50  ;;  %v51_v55 = vld [vmem:[%s3690_s1 + $0x110] sm:$0xff]  ;;  %v52_v56 = vld [vmem:[%s3690_s1 + $0x118] sm:$0xff]  ;;  %p3210_p0 = scmp.ne.s32.totalorder %s2437_s12, %s3209_s13  ;;  %p3215_p2 = scmp.lt.s32.totalorder %s3209_s13, %s3209_s13 }
  0x17   :  { %2996 = vmatprep.subr.bf16.mxu1 %v2995_v37  ;;  %2741 = vmatprep.mubr.msk.f32.mxu0 %vm65_vm0, %v3284_v11  ;;  %v3023_v57 = vpack.c.bf16 %v54_v53, %v53_v52  ;;  %v55_v58 = vld [vmem:[%s3690_s1 + $0x130] sm:$0xff]  ;;  %v56_v59 = vld [vmem:[%s3690_s1 + $0x138] sm:$0xff]  ;;  %v3019_v60 = vpack.c.bf16 %v52_v56, %v51_v55  ;;  %v57_v62 = vld [vmem:[%s3690_s1 + $0x140] sm:$0xff]  ;;  %v1330_v46 = vshrl.u32 %v1329_v45, 7  ;;  %v1335_v47 = vand.u32 127, %v1329_v45 }
  0x18   :  { %2752 = vmatprep.mubr.msk.f32.mxu1 %vm65_vm0, %v3284_v11  ;;  %v3027_v61 = vpack.c.bf16 %v56_v59, %v55_v58  ;;  %v58_v63 = vld [vmem:[%s3690_s1 + $0x148] sm:$0xff]  ;;  %v61_v0 = vld [vmem:[%s3690_s1 + $0x160] sm:$0xff]  ;;  %v59_v3 = vld [vmem:[%s3690_s1 + $0x150] sm:$0xff]  ;;  %v3233_v55 = vmov -1e+30   ;;  %p3216_p3 = por %p3215_p2, %p3214_p1 }
  0x19   :  { %2990 = vmatpush3.bf16.msra.mxu0 %v2987_v36  ;;  %v62_v1 = vld [vmem:[%s3690_s1 + $0x168] sm:$0xff]  ;;  %v3031_v2 = vpack.c.bf16 %v58_v63, %v57_v62  ;;  %v60_v4 = vld [vmem:[%s3690_s1 + $0x158] sm:$0xff]  ;;  %v63_v7 = vld [vmem:[%s3690_s1 + $0x170] sm:$0xff]  ;;  %v1336_v50 = vshra.s32 %v1335_v47, 3 }
  0x1a   :  { %2998 = vmatpush3.bf16.msra.mxu1 %v2995_v37  ;;  %3000 = vmatprep.subr.bf16.mxu0 %v2999_v42  ;;  %v3039_v5 = vpack.c.bf16 %v62_v1, %v61_v0  ;;  %v3035_v6 = vpack.c.bf16 %v60_v4, %v59_v3  ;;  %v64_v8 = vld [vmem:[%s3690_s1 + $0x178] sm:$0xff]  ;;  %vm3463_vm2 = vmpackc.low %vm972_vm1, %vm972_vm1  ;;  %p3217_p4 = pnand %p3216_p3, %p3210_p0 }
  0x1b   :  { %3008 = vmatprep.subr.bf16.mxu1 %v3007_v43  ;;  %v3043_v9 = vpack.c.bf16 %v64_v8, %v63_v7 }
  0x1c   :  { %2742 = vmatmul.mubr.msk.f32.vlgmr.msra.gmra.mrb[4].mxu0 %vm65_vm0, %v3317_v23 }
  0x1d   :  { %2753 = vmatmul.mubr.msk.f32.vlgmr.msra.gmra.mrb[4].mxu1 %vm65_vm0, %v3317_v23  ;;  %3002 = vmatpush3.bf16.msra.mxu0 %v2999_v42 }
  0x1e   :  { %3010 = vmatpush3.bf16.msra.mxu1 %v3007_v43  ;;  %3004 = vmatprep.subr.bf16.mxu0 %v3003_v48 }
  0x1f   :  { %3012 = vmatprep.subr.bf16.mxu1 %v3011_v49  ;;  %2763 = vmatprep.mubr.msk.f32.mxu0 %vm65_vm0, %v3284_v11 }
  0x20   :  { %2774 = vmatprep.mubr.msk.f32.mxu1 %vm65_vm0, %v3284_v11 }
  0x21   :  { %3006 = vmatpush3.bf16.msra.mxu0 %v3003_v48  ;;  %v1331_v48 = vadd.s32 8, %v1330_v46 }
  0x22   :  { %3014 = vmatpush3.bf16.msra.mxu1 %v3011_v49  ;;  %3016 = vmatprep.subr.bf16.mxu0 %v3015_v54  ;;  %v1332_v49 = vshra.s32 %v1330_v46, 3 }
  0x23   :  { %3024 = vmatprep.subr.bf16.mxu1 %v3023_v57  ;;  %v1333_v51 = vshra.s32 %v1331_v48, 3 }
  0x24   :  { %2764 = vmatmul.mubr.msk.f32.vlgmr.msra.gmra.mrb[6].mxu0 %vm65_vm0, %v3317_v23  ;;  %vm1337_vm3 = vcmp.eq.s32.totalorder %v1332_v49, %v1336_v50 }
  0x25   :  { %2775 = vmatmul.mubr.msk.f32.vlgmr.msra.gmra.mrb[6].mxu1 %vm65_vm0, %v3317_v23  ;;  %3018 = vmatpush3.bf16.msra.mxu0 %v3015_v54  ;;  %vm1338_vm4 = vcmp.eq.s32.totalorder %v1333_v51, %v1336_v50  ;;  %v1339_v56 = vsel %vm1337_vm3, 0.0, %v3233_v55 }
  0x26   :  { %3020 = vmatprep.subr.bf16.mxu0 %v3019_v60  ;;  %3026 = vmatpush3.bf16.msra.mxu1 %v3023_v57  ;;  %v1340_v62 = vsel %vm1338_vm4, 0.0, %v3233_v55 }
  0x27   :  { %2785 = vmatprep.mubr.msk.f32.mxu0 %vm65_vm0, %v3284_v11  ;;  %3028 = vmatprep.subr.bf16.mxu1 %v3027_v61 }
  0x28   :  { %2796 = vmatprep.mubr.msk.f32.mxu1 %vm65_vm0, %v3284_v11 }
  0x29   :  { %3022 = vmatpush3.bf16.msra.mxu0 %v3019_v60 }
  0x2a   :  { %3032 = vmatprep.subr.bf16.mxu0 %v3031_v2  ;;  %3030 = vmatpush3.bf16.msra.mxu1 %v3027_v61 }
  0x2b   :  { %3040 = vmatprep.subr.bf16.mxu1 %v3039_v5 }
  0x2c   :  { %2786 = vmatmul.mubr.msk.f32.vlgmr.msra.gmra.mrb[8].mxu0 %vm65_vm0, %v3317_v23 }
  0x2d   :  { %3034 = vmatpush3.bf16.msra.mxu0 %v3031_v2  ;;  %2797 = vmatmul.mubr.msk.f32.vlgmr.msra.gmra.mrb[8].mxu1 %vm65_vm0, %v3317_v23 }
  0x2e   :  { %3036 = vmatprep.subr.bf16.mxu0 %v3035_v6  ;;  %3042 = vmatpush3.bf16.msra.mxu1 %v3039_v5 }
  0x2f   :  { %2807 = vmatprep.mubr.msk.f32.mxu0 %vm65_vm0, %v3284_v11  ;;  %2818 = vmatprep.mubr.msk.f32.mxu1 %vm65_vm0, %v3284_v11 }
  0x30   :  { %3044 = vmatprep.subr.bf16.mxu1 %v3043_v9 }
  0x31   :  { %3038 = vmatpush3.bf16.msra.mxu0 %v3035_v6 }
  0x32   :  { %3046 = vmatpush3.bf16.msra.mxu1 %v3043_v9 }
  0x34   :  { %2808 = vmatmul.mubr.msk.f32.vlgmr.msra.gmra.mrb[10].mxu0 %vm65_vm0, %v3317_v23 }
  0x35   :  { %2819 = vmatmul.mubr.msk.f32.vlgmr.msra.gmra.mrb[10].mxu1 %vm65_vm0, %v3317_v23 }
  0xdf   :  { %v2699_v10 = vpop.f32.mrb[0].mxu0 }
  0xe0   :  { %v138_v12 = vpop.f32.mrb[1].mxu0  ;;  %v2710_v13 = vpop.f32.mrb[0].mxu1 }
  0xe1   :  { %2825 = vmatprep.mubr.msk.f32.mxu0 %vm972_vm1, %v138_v12  ;;  %v213_v14 = vpop.f32.mrb[1].mxu1 }
  0xe2   :  { %2832 = vmatprep.mubr.msk.f32.mxu1 %vm972_vm1, %v213_v14 }
  0xe7   :  { %v2721_v15 = vpop.f32.mrb[2].mxu0 }
  0xe8   :  { %v288_v16 = vpop.f32.mrb[3].mxu0  ;;  %v2732_v17 = vpop.f32.mrb[2].mxu1 }
  0xe9   :  { %v363_v18 = vpop.f32.mrb[3].mxu1 }
  0xef   :  { %v2743_v19 = vpop.f32.mrb[4].mxu0 }
  0xf0   :  { %v2754_v20 = vpop.f32.mrb[4].mxu1  ;;  %v438_v21 = vpop.f32.mrb[5].mxu0 }
  0xf1   :  { %v3047_v24 = vpack.c.bf16 %v2743_v19, %v438_v21  ;;  %v513_v25 = vpop.f32.mrb[5].mxu1 }
  0xf2   :  { %v3053_v26 = vpack.c.bf16 %v2754_v20, %v513_v25 }
  0xf3   :  { %3049 = vmatprep.subr.msk.bf16.mxu0 %vm3463_vm2, %v3047_v24 }
  0xf4   :  { %3055 = vmatprep.subr.msk.bf16.mxu1 %vm3463_vm2, %v3053_v26  ;;  %3052 = vmatpush3.bf16.xpose.msk.msra.mxu0 %vm3463_vm2, %v3047_v24 }
  0xf5   :  { %3058 = vmatpush3.bf16.xpose.msk.msra.mxu1 %vm3463_vm2, %v3053_v26 }
  0xf7   :  { %v2765_v27 = vpop.f32.mrb[6].mxu0 }
  0xf8   :  { %v2776_v28 = vpop.f32.mrb[6].mxu1  ;;  %v588_v29 = vpop.f32.mrb[7].mxu0 }
  0xf9   :  { %v3059_v30 = vpack.c.bf16 %v2765_v27, %v588_v29  ;;  %v663_v31 = vpop.f32.mrb[7].mxu1 }
  0xfa   :  { %v3065_v32 = vpack.c.bf16 %v2776_v28, %v663_v31 }
  0xfb   :  { %2826 = vmatmul.mubr.msk.f32.vlgmr.msra.gmra.mrb[12].mxu0 %vm972_vm1, %v2699_v10  ;;  %3061 = vmatprep.subr.msk.bf16.mxu0 %vm3463_vm2, %v3059_v30 }
  0xfc   :  { %2833 = vmatmul.mubr.msk.f32.vlgmr.msra.gmra.mrb[12].mxu1 %vm972_vm1, %v2710_v13  ;;  %3067 = vmatprep.subr.msk.bf16.mxu1 %vm3463_vm2, %v3065_v32 }
  0xfd   :  { %3064 = vmatpush3.bf16.xpose.msk.msra.mxu0 %vm3463_vm2, %v3059_v30  ;;  %2839 = vmatprep.mubr.msk.f32.mxu0 %vm972_vm1, %v288_v16 }
  0xfe   :  { %3070 = vmatpush3.bf16.xpose.msk.msra.mxu1 %vm3463_vm2, %v3065_v32  ;;  %2846 = vmatprep.mubr.msk.f32.mxu1 %vm972_vm1, %v363_v18 }
  0xff   :  { %v2787_v33 = vpop.f32.mrb[8].mxu0 }
 0x100   :  { %v738_v34 = vpop.f32.mrb[9].mxu0  ;;  %v2798_v35 = vpop.f32.mrb[8].mxu1 }
 0x101   :  { %v3071_v36 = vpack.c.bf16 %v2787_v33, %v738_v34  ;;  %v813_v37 = vpop.f32.mrb[9].mxu1 }
 0x102   :  { %v3487_v38 = vpack.c.bf16 %v2798_v35, %v813_v37 }
 0x103   :  { %3072 = vmatprep.subr.bf16.mxu1 %v3071_v36 }
 0x104   :  { %2840 = vmatmul.mubr.msk.f32.vlgmr.msra.gmra.mrb[14].mxu0 %vm972_vm1, %v2721_v15 }
 0x105   :  { %2847 = vmatmul.mubr.msk.f32.vlgmr.msra.gmra.mrb[14].mxu1 %vm972_vm1, %v2732_v17 }
 0x106   :  { %3074 = vmatpush3.bf16.msra.mxu1 %v3071_v36 }
 0x107   :  { %3076 = vmatprep.subr.bf16.mxu1 %v3487_v38  ;;  %v2809_v39 = vpop.f32.mrb[10].mxu0 }
 0x108   :  { %v888_v40 = vpop.f32.mrb[11].mxu0  ;;  %v2820_v42 = vpop.f32.mrb[10].mxu1 }
 0x109   :  { %v3079_v41 = vpack.c.bf16 %v2809_v39, %v888_v40  ;;  %v963_v43 = vpop.f32.mrb[11].mxu1 }
 0x10a   :  { %v3492_v44 = vpack.c.bf16 %v2820_v42, %v963_v43 }
 0x10b   :  { %3080 = vmatprep.subr.bf16.mxu0 %v3079_v41 }
 0x10c   :  { %3082 = vmatpush3.bf16.msra.mxu0 %v3079_v41 }
 0x1ce   :  { %v2827_v52 = vpop.f32.mrb[12].mxu0 }
 0x1cf   :  { %v2834_v53 = vpop.f32.mrb[12].mxu1  ;;  %v1051_v54 = vpop.f32.mrb[13].mxu0  ;;  %v1322_v57 = vmul.f32 0.35355338, %v2827_v52 }
 0x1d0   :  { %v1321_v58 = vmul.f32 0.35355338, %v1051_v54  ;;  %v1138_v59 = vpop.f32.mrb[13].mxu1  ;;  %v1324_v60 = vmul.f32 0.35355338, %v2834_v53 }
 0x1d1   :  { %v1323_v61 = vmul.f32 0.35355338, %v1138_v59  ;;  %v1342_v2 = vadd.f32 %v1340_v62, %v1322_v57 }
 0x1d2   :  { %v1341_v63 = vadd.f32 %v1339_v56, %v1321_v58  ;;  %v1344_v4 = vadd.f32 %v1340_v62, %v1324_v60 }
 0x1d3   :  { %v1343_v0 = vadd.f32 %v1339_v56, %v1323_v61  ;;  %v1353_v9 = vsel %vm1349_vm5, %v1342_v2, -inf }
 0x1d4   :  { %v1350_v1 = vsel %vm1349_vm5, %v1341_v63, -inf  ;;  %v1359_v14 = vsel %vm1349_vm5, %v1344_v4, -inf }
 0x1d5   :  { %v1356_v3 = vsel %vm1349_vm5, %v1343_v0, -inf  ;;  %1351 = vmax.xlane.f32.xlu0 %v1350_v1 }
 0x1d6   :  { %1357 = vmax.xlane.f32.xlu1 %v1356_v3 }
 0x1d7   :  { %v2841_v5 = vpop.f32.mrb[14].mxu0 }
 0x1d8   :  { %v1326_v6 = vmul.f32 0.35355338, %v2841_v5  ;;  %v2848_v7 = vpop.f32.mrb[14].mxu1  ;;  %v1225_v8 = vpop.f32.mrb[15].mxu0  ;;  %v2500_v5 = vld [vmem:[%s3690_s1 + $0x1a8] sm:$0xff] }
 0x1d9   :  { %v1328_v10 = vmul.f32 0.35355338, %v2848_v7  ;;  %v1325_v12 = vmul.f32 0.35355338, %v1225_v8  ;;  %v1312_v13 = vpop.f32.mrb[15].mxu1  ;;  %1354 = vmax.xlane.f32.xlu0 %v1353_v9 }
 0x1da   :  { %v1327_v15 = vmul.f32 0.35355338, %v1312_v13  ;;  %1360 = vmax.xlane.f32.xlu1 %v1359_v14  ;;  %v1346_v16 = vadd.f32 %v1340_v62, %v1326_v6 }
 0x1db   :  { %v1345_v17 = vadd.f32 %v1339_v56, %v1325_v12  ;;  %v1348_v20 = vadd.f32 %v1340_v62, %v1328_v10 }
 0x1dc   :  { %v1365_v18 = vsel %vm1349_vm5, %v1346_v16, -inf  ;;  %v1347_v21 = vadd.f32 %v1339_v56, %v1327_v15 }
 0x1dd   :  { %v1362_v19 = vsel %vm1349_vm5, %v1345_v17, -inf  ;;  %v1371_v24 = vsel %vm1349_vm5, %v1348_v20, -inf }
 0x1de   :  { %1366 = vmax.xlane.f32.xlu1 %v1365_v18  ;;  %1363 = vmax.xlane.f32.xlu0 %v1362_v19  ;;  %v1368_v25 = vsel %vm1349_vm5, %v1347_v21, -inf }
 0x1e2   :  { %1372 = vmax.xlane.f32.xlu1 %v1371_v24  ;;  %1369 = vmax.xlane.f32.xlu0 %v1368_v25  ;;  %v2495_v24 = vld [vmem:[%s3690_s1 + $0x180] sm:$0xff]  ;;  %v2496_v25 = vld [vmem:[%s3690_s1 + $0x188] sm:$0xff] }
 0x262   :  { %v1352_v26 = vpop.xlane.xlu0 %1351 }
 0x263   :  { %v1358_v27 = vpop.xlane.xlu1 %1357  ;;  %v1374_v28 = vsub.f32 %v1341_v63, %v1352_v26 }
 0x264   :  { %v1376_v29 = vsub.f32 %v1343_v0, %v1358_v27 }
 0x265   :  { %v1382_v30 = vmul.f32 1.442695, %v1374_v28  ;;  %v3087_v28 = vpack.c.bf16 %v2496_v25, %v2495_v24  ;;  %v2161_v25 = vld [vmem:[%s3691_s2 + $0x20] sm:$0xff] }
 0x266   :  { %v1386_v31 = vmul.f32 1.442695, %v1376_v29  ;;  %v1355_v32 = vpop.xlane.xlu0 %1354 }
 0x267   :  { %3169 = vpow2.f32 %v1382_v30  ;;  %v1361_v33 = vpop.xlane.xlu1 %1360  ;;  %v1375_v34 = vsub.f32 %v1342_v2, %v1355_v32  ;;  %v2501_v30 = vld [vmem:[%s3690_s1 + $0x1b0] sm:$0xff] }
 0x268   :  { %v1377_v35 = vsub.f32 %v1344_v4, %v1361_v33  ;;  %3171 = vpow2.f32 %v1386_v31  ;;  %v2499_v4 = vld [vmem:[%s3690_s1 + $0x1a0] sm:$0xff]  ;;  %v2502_v31 = vld [vmem:[%s3690_s1 + $0x1b8] sm:$0xff] }
 0x269   :  { %v1384_v36 = vmul.f32 1.442695, %v1375_v34  ;;  %v3099_v6 = vpack.c.bf16 %v2500_v5, %v2499_v4  ;;  %v3105_v34 = vpack.c.bf16 %v2502_v31, %v2501_v30 }
 0x26a   :  { %v1388_v37 = vmul.f32 1.442695, %v1377_v35 }
 0x26b   :  { %3173 = vpow2.f32 %v1384_v36  ;;  %v1367_v39 = vpop.xlane.xlu1 %1366  ;;  %v1364_v40 = vpop.xlane.xlu0 %1363  ;;  %3101 = vmatprep.subr.msk.bf16.mxu0 %vm3463_vm2, %v3099_v6 }
 0x26c   :  { %v1379_v41 = vsub.f32 %v1346_v16, %v1367_v39  ;;  %v1378_v42 = vsub.f32 %v1345_v17, %v1364_v40  ;;  %3175 = vpow2.f32 %v1388_v37  ;;  %v2497_v37 = vld [vmem:[%s3690_s1 + $0x190] sm:$0xff]  ;;  %v2498_v39 = vld [vmem:[%s3690_s1 + $0x198] sm:$0xff] }
 0x26e   :  { %v1392_v43 = vmul.f32 1.442695, %v1379_v41  ;;  %v1390_v45 = vmul.f32 1.442695, %v1378_v42  ;;  %v3093_v41 = vpack.c.bf16 %v2498_v39, %v2497_v37  ;;  %v2503_v42 = vld [vmem:[%s3690_s1 + $0x1c0] sm:$0xff] }
 0x26f   :  { %v1373_v46 = vpop.xlane.xlu1 %1372  ;;  %v1370_v47 = vpop.xlane.xlu0 %1369  ;;  %v2536_v39 = vld [vmem:[%s3691_s2 + $0x61] ss:$0 sm:$0xff] }
 0x270   :  { %3177 = vpow2.f32 %v1392_v43  ;;  %v1381_v48 = vsub.f32 %v1348_v20, %v1373_v46  ;;  %v1380_v49 = vsub.f32 %v1347_v21, %v1370_v47  ;;  %v2504_v43 = vld [vmem:[%s3690_s1 + $0x1c8] sm:$0xff] }
 0x271   :  { %v3170_v50 = vpop.eup %3169  ;;  %3179 = vpow2.f32 %v1390_v45  ;;  %v3111_v45 = vpack.c.bf16 %v2504_v43, %v2503_v42  ;;  %v2164_v42 = vld [vmem:[%s3691_s2 + $0x38] sm:$0xff] }
 0x272   :  { %v1396_v51 = vmul.f32 1.442695, %v1381_v48  ;;  %v1394_v52 = vmul.f32 1.442695, %v1380_v49  ;;  %v1398_v53 = vsel %vm1349_vm5, %v3170_v50, 0.0  ;;  %v3172_v54 = vpop.eup %3171  ;;  %v2505_v48 = vld [vmem:[%s3690_s1 + $0x1d0] sm:$0xff] }
 0x273   :  { %1399 = vadd.xlane.f32.xlu0 %v1398_v53  ;;  %v1404_v57 = vsel %vm1349_vm5, %v3172_v54, 0.0  ;;  %v2506_v49 = vld [vmem:[%s3690_s1 + $0x1d8] sm:$0xff] }
 0x274   :  { %3181 = vpow2.f32 %v1396_v51 }
 0x275   :  { %v3174_v55 = vpop.eup %3173  ;;  %3183 = vpow2.f32 %v1394_v52  ;;  %v3117_v52 = vpack.c.bf16 %v2506_v49, %v2505_v48  ;;  %v2166_v48 = vld [vmem:[%s3691_s2 + $0x48] sm:$0xff] }
 0x276   :  { %v1401_v56 = vsel %vm1349_vm5, %v3174_v55, 0.0  ;;  %v3176_v58 = vpop.eup %3175 }
 0x277   :  { %1402 = vadd.xlane.f32.xlu1 %v1401_v56  ;;  %1405 = vadd.xlane.f32.xlu0 %v1404_v57  ;;  %v1407_v60 = vsel %vm1349_vm5, %v3176_v58, 0.0  ;;  %v2508_v56 = vld [vmem:[%s3690_s1 + $0x1e8] sm:$0xff] }
 0x27a   :  { %v3178_v59 = vpop.eup %3177 }
 0x27b   :  { %v3180_v61 = vpop.eup %3179  ;;  %1408 = vadd.xlane.f32.xlu1 %v1407_v60  ;;  %v1413_v0 = vsel %vm1349_vm5, %v3178_v59, 0.0  ;;  %v2509_v60 = vld [vmem:[%s3690_s1 + $0x1f0] sm:$0xff] }
 0x27c   :  { %v1410_v62 = vsel %vm1349_vm5, %v3180_v61, 0.0 }
 0x27d   :  { %1411 = vadd.xlane.f32.xlu0 %v1410_v62 }
 0x27e   :  { %v3182_v63 = vpop.eup %3181 }
 0x27f   :  { %v3184_v1 = vpop.eup %3183  ;;  %1414 = vadd.xlane.f32.xlu1 %v1413_v0  ;;  %v1419_v3 = vsel %vm1349_vm5, %v3182_v63, 0.0 }
 0x280   :  { %v1416_v2 = vsel %vm1349_vm5, %v3184_v1, 0.0 }
 0x281   :  { %1417 = vadd.xlane.f32.xlu0 %v1416_v2 }
 0x283   :  { %1420 = vadd.xlane.f32.xlu1 %v1419_v3 }
 0x300   :  { %v1400_v7 = vpop.xlane.xlu0 %1399 }
 0x301   :  { %3185 = vrcp.f32 %v1400_v7 }
 0x304   :  { %v1403_v8 = vpop.xlane.xlu1 %1402  ;;  %v1406_v9 = vpop.xlane.xlu0 %1405 }
 0x305   :  { %3187 = vrcp.f32 %v1403_v8 }
 0x306   :  { %3189 = vrcp.f32 %v1406_v9 }
 0x308   :  { %v1409_v10 = vpop.xlane.xlu1 %1408 }
 0x309   :  { %3191 = vrcp.f32 %v1409_v10 }
 0x30a   :  { %v1412_v12 = vpop.xlane.xlu0 %1411 }
 0x30b   :  { %v3186_v13 = vpop.eup %3185  ;;  %3193 = vrcp.f32 %v1412_v12 }
 0x30c   :  { %v1415_v14 = vpop.xlane.xlu1 %1414  ;;  %v1430_v15 = vmul.f32 %v3186_v13, %v3170_v50 }
 0x30d   :  { %3195 = vrcp.f32 %v1415_v14 }
 0x30e   :  { %v1418_v16 = vpop.xlane.xlu0 %1417  ;;  %2853 = vmatprep.mubr.msk.f32.mxu1 %vm1349_vm5, %v1430_v15 }
 0x30f   :  { %v3188_v17 = vpop.eup %3187  ;;  %3197 = vrcp.f32 %v1418_v16 }
 0x310   :  { %v3190_v18 = vpop.eup %3189  ;;  %v1431_v19 = vmul.f32 %v3188_v17, %v3174_v55  ;;  %v1421_v20 = vpop.xlane.xlu1 %1420  ;;  %v2507_v55 = vld [vmem:[%s3690_s1 + $0x1e0] sm:$0xff] }
 0x311   :  { %3199 = vrcp.f32 %v1421_v20  ;;  %v1432_v21 = vmul.f32 %v3190_v18, %v3172_v54  ;;  %v2158_v18 = vld [vmem:[%s3691_s2 + $0x8] sm:$0xff]  ;;  %v2159_v20 = vld [vmem:[%s3691_s2 + $0x10] sm:$0xff] }
 0x312   :  { %2854 = vmatmul.mubr.msk.f32.vlgmr.msra.gmra.mrb[16].mxu1 %vm1349_vm5, %v1431_v19 }
 0x313   :  { %v3192_v26 = vpop.eup %3191  ;;  %3078 = vmatpush3.bf16.msra.mxu1 %v3487_v38  ;;  %2860 = vmatprep.mubr.msk.f32.mxu1 %vm1349_vm5, %v1432_v21  ;;  %v2160_v21 = vld [vmem:[%s3691_s2 + $0x18] sm:$0xff] }
 0x314   :  { %v1433_v27 = vmul.f32 %v3192_v26, %v3176_v58  ;;  %3084 = vmatprep.subr.bf16.mxu1 %v3492_v44  ;;  %v3139_v24 = vpack.c.bf16 %v2160_v21, %v2159_v20  ;;  %v2162_v26 = vld [vmem:[%s3691_s2 + $0x28] sm:$0xff]  ;;  %v2543_v20 = vld [vmem:[%s3691_s2 + $0x62] ss:$0 sm:$0xff] }
 0x315   :  { %v3194_v29 = vpop.eup %3193 }
 0x316   :  { %2861 = vmatmul.mubr.msk.f32.vlgmr.msra.gmra.mrb[18].mxu1 %vm1349_vm5, %v1433_v27  ;;  %v1434_v32 = vmul.f32 %v3194_v29, %v3180_v61  ;;  %v2510_v61 = vld [vmem:[%s3690_s1 + $0x1f8] sm:$0xff]  ;;  %v3143_v27 = vpack.c.bf16 %v2162_v26, %v2161_v25  ;;  %v2544_v26 = vld [vmem:[%s3691_s2 + $0x63] ss:$0 sm:$0xff] }
 0x317   :  { %v3196_v33 = vpop.eup %3195  ;;  %3086 = vmatpush3.bf16.msra.mxu1 %v3492_v44  ;;  %v3129_v62 = vpack.c.bf16 %v2510_v61, %v2509_v60  ;;  %v2540_v60 = vld [vmem:[%s3691_s2 + $0x65] ss:$0 sm:$0xff] }
 0x318   :  { %v1435_v38 = vmul.f32 %v3196_v33, %v3178_v59  ;;  %2867 = vmatprep.mubr.msk.f32.mxu0 %vm1349_vm5, %v1434_v32  ;;  %3089 = vmatprep.subr.msk.bf16.mxu1 %vm3463_vm2, %v3087_v28  ;;  %v3123_v59 = vpack.c.bf16 %v2508_v56, %v2507_v55 }
 0x319   :  { %v3198_v35 = vpop.eup %3197 }
 0x31a   :  { %2868 = vmatmul.mubr.msk.f32.vlgmr.msra.gmra.mrb[16].mxu0 %vm1349_vm5, %v1435_v38  ;;  %v1436_v36 = vmul.f32 %v3198_v35, %v3184_v1 }
 0x31b   :  { %v3200_v44 = vpop.eup %3199  ;;  %3104 = vmatpush3.bf16.xpose.msk.msra.mxu0 %vm3463_vm2, %v3099_v6 }
 0x31c   :  { %v1437_v40 = vmul.f32 %v3200_v44, %v3182_v63  ;;  %2874 = vmatprep.mubr.msk.f32.mxu1 %vm1349_vm5, %v1436_v36  ;;  %3107 = vmatprep.subr.msk.bf16.mxu0 %vm3463_vm2, %v3105_v34 }
 0x31e   :  { %2875 = vmatmul.mubr.msk.f32.vlgmr.msra.gmra.mrb[20].mxu1 %vm1349_vm5, %v1437_v40 }
 0x320   :  { %3092 = vmatpush3.bf16.xpose.msk.msra.mxu1 %vm3463_vm2, %v3087_v28 }
 0x321   :  { %3095 = vmatprep.subr.msk.bf16.mxu1 %vm3463_vm2, %v3093_v41 }
 0x323   :  { %3110 = vmatpush3.bf16.xpose.msk.msra.mxu0 %vm3463_vm2, %v3105_v34  ;;  %v2535_v34 = vld [vmem:[%s3691_s2 + $0x60] ss:$0 sm:$0xff] }
 0x324   :  { %3113 = vmatprep.subr.msk.bf16.mxu0 %vm3463_vm2, %v3111_v45 }
 0x328   :  { %3098 = vmatpush3.bf16.xpose.msk.msra.mxu1 %vm3463_vm2, %v3093_v41  ;;  %v2163_v41 = vld [vmem:[%s3691_s2 + $0x30] sm:$0xff] }
 0x3e5   :  { %v2855_v46 = vpop.f32.mrb[16].mxu1 }
 0x3e6   :  { %v1510_v47 = vpop.f32.mrb[17].mxu1 }
 0x3e7   :  { %2885 = vmatprep.mubr.msk.f32.mxu1 %vm972_vm1, %v1510_v47  ;;  %v2165_v47 = vld [vmem:[%s3691_s2 + $0x40] sm:$0xff] }
 0x3e8   :  { %2886 = vmatmul.mubr.msk.f32.vlgmr.msra.gmra.mrb[22].mxu1 %vm972_vm1, %v2855_v46  ;;  %v3147_v46 = vpack.c.bf16 %v2164_v42, %v2163_v41  ;;  %v3151_v49 = vpack.c.bf16 %v2166_v48, %v2165_v47 }
 0x3e9   :  { %v2862_v50 = vpop.f32.mrb[18].mxu1 }
 0x3ea   :  { %v1591_v51 = vpop.f32.mrb[19].mxu1 }
 0x3eb   :  { %2896 = vmatprep.mubr.msk.f32.mxu0 %vm972_vm1, %v1591_v51  ;;  %v2168_v51 = vld [vmem:[%s3691_s2 + $0x58] sm:$0xff] }
 0x3ec   :  { %2897 = vmatmul.mubr.msk.f32.vlgmr.msra.gmra.mrb[18].mxu0 %vm972_vm1, %v2862_v50  ;;  %v2167_v50 = vld [vmem:[%s3691_s2 + $0x50] sm:$0xff] }
 0x3ed   :  { %3116 = vmatpush3.bf16.xpose.msk.msra.mxu0 %vm3463_vm2, %v3111_v45  ;;  %v2869_v53 = vpop.f32.mrb[16].mxu0 }
 0x3ee   :  { %v1672_v54 = vpop.f32.mrb[17].mxu0  ;;  %3119 = vmatprep.subr.msk.bf16.mxu0 %vm3463_vm2, %v3117_v52 }
 0x3ef   :  { %2907 = vmatprep.mubr.msk.f32.mxu0 %vm972_vm1, %v1672_v54 }
 0x3f1   :  { %v2876_v57 = vpop.f32.mrb[20].mxu1 }
 0x3f2   :  { %v1753_v58 = vpop.f32.mrb[21].mxu1 }
 0x3f5   :  { %3122 = vmatpush3.bf16.xpose.msk.msra.mxu0 %vm3463_vm2, %v3117_v52  ;;  %v3155_v52 = vpack.c.bf16 %v2168_v51, %v2167_v50 }
 0x3f6   :  { %3125 = vmatprep.subr.msk.bf16.mxu0 %vm3463_vm2, %v3123_v59 }
 0x3fc   :  { %2908 = vmatmul.mubr.msk.f32.vlgmr.msra.gmra.mrb[18].mxu0 %vm972_vm1, %v2869_v53  ;;  %v2537_v53 = vld [vmem:[%s3691_s2 + $0x64] ss:$0 sm:$0xff] }
 0x3fd   :  { %3128 = vmatpush3.bf16.xpose.msk.msra.mxu0 %vm3463_vm2, %v3123_v59  ;;  %2918 = vmatprep.mubr.msk.f32.mxu0 %vm972_vm1, %v1753_v58 }
 0x3fe   :  { %3131 = vmatprep.subr.msk.bf16.mxu0 %vm3463_vm2, %v3129_v62 }
 0x405   :  { %3134 = vmatpush3.bf16.xpose.msk.msra.mxu0 %vm3463_vm2, %v3129_v62 }
 0x40c   :  { %2919 = vmatmul.mubr.msk.f32.vlgmr.msra.gmra.mrb[18].mxu0 %vm972_vm1, %v2876_v57 }
 0x4bb   :  { %v2887_v63 = vpop.f32.mrb[22].mxu1 }
 0x4bc   :  { %v1863_v0 = vpop.f32.mrb[23].mxu1 }
 0x4df   :  { %v2920_v1 = vpop.f32.mrb[18].mxu0 }
 0x4e0   :  { %v3159_v2 = vadd.f32 %v2920_v1, %v2887_v63  ;;  %v2142_v3 = vpop.f32.mrb[19].mxu0 }
 0x4e1   :  { %v3160_v4 = vadd.f32 %v2142_v3, %v1863_v0 }
 0x4e2   :  { %v2176_v5 = vadd.f32 %v3159_v2, %v3317_v23 }
 0x4e3   :  { %v2175_v6 = vadd.f32 %v3160_v4, %v3284_v11  ;;  %v2157_v11 = vld [vmem:[%s3691_s2] sm:$0xff] }
 0x4e4   :  { %v2180_v7 = vsel %vm65_vm0, %v2176_v5, 0.0  ;;  %v3135_v19 = vpack.c.bf16 %v2158_v18, %v2157_v11 }
 0x4e5   :  { %2181 = vadd.xlane.f32.xlu1 %v2180_v7  ;;  %v2177_v8 = vsel %vm65_vm0, %v2175_v6, 0.0 }
 0x4e6   :  { %2178 = vadd.xlane.f32.xlu0 %v2177_v8  ;;  %3136 = vmatprep.subr.bf16.mxu1 %v3135_v19 }
 0x4e7   :  { %3138 = vmatpush3.bf16.msra.mxu1 %v3135_v19 }
 0x4e8   :  { %3140 = vmatprep.subr.bf16.mxu1 %v3139_v24 }
 0x4eb   :  { %3142 = vmatpush3.bf16.msra.mxu1 %v3139_v24 }
 0x4ec   :  { %3144 = vmatprep.subr.bf16.mxu1 %v3143_v27 }
 0x572   :  { %v2182_v22 = vpop.xlane.xlu1 %2181 }
 0x573   :  { %v2185_v9 = vmul.f32 0.03125, %v2182_v22  ;;  %v2179_v10 = vpop.xlane.xlu0 %2178 }
 0x574   :  { %v2184_v12 = vmul.f32 0.03125, %v2179_v10 }
 0x575   :  { %v2187_v13 = vsub.f32 %v2176_v5, %v2185_v9 }
 0x576   :  { %v2186_v14 = vsub.f32 %v2175_v6, %v2184_v12 }
 0x577   :  { %v2189_v15 = vmul.f32 %v2187_v13, %v2187_v13 }
 0x578   :  { %v2188_v16 = vmul.f32 %v2186_v14, %v2186_v14 }
 0x579   :  { %v2193_v17 = vsel %vm65_vm0, %v2189_v15, 0.0 }
 0x57a   :  { %2194 = vadd.xlane.f32.xlu1 %v2193_v17  ;;  %v2190_v23 = vsel %vm65_vm0, %v2188_v16, 0.0 }
 0x57b   :  { %2191 = vadd.xlane.f32.xlu0 %v2190_v23 }
 0x607   :  { %v2195_v28 = vpop.xlane.xlu1 %2194 }
 0x608   :  { %v2197_v29 = vmul.f32 0.03125, %v2195_v28  ;;  %v2192_v30 = vpop.xlane.xlu0 %2191 }
 0x609   :  { %v2196_v31 = vmul.f32 0.03125, %v2192_v30 }
 0x60a   :  { %v2199_v32 = vadd.f32 1e-05, %v2197_v29 }
 0x60b   :  { %v2198_v33 = vadd.f32 1e-05, %v2196_v31 }
 0x60c   :  { %3201 = vrsqrt.f32 %v2199_v32 }
 0x60d   :  { %3203 = vrsqrt.f32 %v2198_v33 }
 0x616   :  { %v3202_v38 = vpop.eup %3201 }
 0x617   :  { %v3204_v35 = vpop.eup %3203  ;;  %v2203_v36 = vmul.f32 %v3202_v38, %v2187_v13 }
 0x618   :  { %v2202_v37 = vmul.f32 %v3204_v35, %v2186_v14 }
 0x619   :  { %v2209_v44 = vmul.f32 %v2535_v34, %v2203_v36 }
 0x61a   :  { %v2208_v40 = vmul.f32 %v2535_v34, %v2202_v37 }
 0x61b   :  { %v2215_v45 = vadd.f32 %v2536_v39, %v2209_v44 }
 0x61c   :  { %v2214_v43 = vadd.f32 %v2536_v39, %v2208_v40 }
 0x61e   :  { %2929 = vmatprep.mubr.msk.f32.mxu1 %vm65_vm0, %v2214_v43 }
 0x61f   :  { %2930 = vmatmul.mubr.msk.f32.vlgmr.msra.gmra.mrb[24].mxu1 %vm65_vm0, %v2215_v45 }
 0x620   :  { %3146 = vmatpush3.bf16.msra.mxu1 %v3143_v27 }
 0x621   :  { %3148 = vmatprep.subr.bf16.mxu1 %v3147_v46 }
 0x624   :  { %3150 = vmatpush3.bf16.msra.mxu1 %v3147_v46 }
 0x625   :  { %3152 = vmatprep.subr.bf16.mxu1 %v3151_v49 }
 0x628   :  { %3154 = vmatpush3.bf16.msra.mxu1 %v3151_v49 }
 0x629   :  { %3156 = vmatprep.subr.bf16.mxu1 %v3155_v52 }
 0x62c   :  { %3158 = vmatpush3.bf16.msra.mxu1 %v3155_v52 }
 0x6f2   :  { %v2931_v54 = vpop.f32.mrb[24].mxu1 }
 0x6f3   :  { %v2298_v55 = vadd.f32 %v2931_v54, %v2537_v53  ;;  %v2292_v56 = vpop.f32.mrb[25].mxu1 }
 0x6f4   :  { %v2293_v57 = vadd.f32 %v2537_v53, %v2292_v56 }
 0x6f5   :  { %v2302_v59 = vmax.f32 %v2298_v55, 0.0 }
 0x6f6   :  { %v2301_v58 = vmax.f32 %v2293_v57, 0.0 }
 0x6f8   :  { %2948 = vmatprep.mubr.msk.f32.mxu1 %vm2307_vm6, %v2301_v58 }
 0x6f9   :  { %2949 = vmatmul.mubr.msk.f32.vlgmr.msra.gmra.mrb[26].mxu1 %vm2307_vm6, %v2302_v59 }
 0x7cc   :  { %v2950_v61 = vpop.f32.mrb[26].mxu1 }
 0x7cd   :  { %v2386_v62 = vadd.f32 %v2950_v61, %v2540_v60  ;;  %v2380_v63 = vpop.f32.mrb[27].mxu1 }
 0x7ce   :  { %v2381_v0 = vadd.f32 %v2540_v60, %v2380_v63 }
 0x7cf   :  { %v2390_v1 = vadd.f32 %v2386_v62, %v2215_v45 }
 0x7d0   :  { %v2389_v2 = vadd.f32 %v2381_v0, %v2214_v43 }
 0x7d1   :  { %v2394_v3 = vsel %vm65_vm0, %v2390_v1, 0.0 }
 0x7d2   :  { %2395 = vadd.xlane.f32.xlu1 %v2394_v3  ;;  %v2391_v4 = vsel %vm65_vm0, %v2389_v2, 0.0 }
 0x7d3   :  { %2392 = vadd.xlane.f32.xlu0 %v2391_v4 }
 0x85f   :  { %v2396_v5 = vpop.xlane.xlu1 %2395 }
 0x860   :  { %v2398_v6 = vmul.f32 0.03125, %v2396_v5  ;;  %v2393_v7 = vpop.xlane.xlu0 %2392 }
 0x861   :  { %v2397_v8 = vmul.f32 0.03125, %v2393_v7 }
 0x862   :  { %v2400_v22 = vsub.f32 %v2390_v1, %v2398_v6 }
 0x863   :  { %v2399_v9 = vsub.f32 %v2389_v2, %v2397_v8 }
 0x864   :  { %v2402_v10 = vmul.f32 %v2400_v22, %v2400_v22 }
 0x865   :  { %v2401_v12 = vmul.f32 %v2399_v9, %v2399_v9 }
 0x866   :  { %v2406_v13 = vsel %vm65_vm0, %v2402_v10, 0.0 }
 0x867   :  { %2407 = vadd.xlane.f32.xlu1 %v2406_v13  ;;  %v2403_v14 = vsel %vm65_vm0, %v2401_v12, 0.0 }
 0x868   :  { %2404 = vadd.xlane.f32.xlu0 %v2403_v14 }
 0x8f4   :  { %v2408_v15 = vpop.xlane.xlu1 %2407 }
 0x8f5   :  { %v2410_v16 = vmul.f32 0.03125, %v2408_v15  ;;  %v2405_v17 = vpop.xlane.xlu0 %2404 }
 0x8f6   :  { %v2409_v23 = vmul.f32 0.03125, %v2405_v17 }
 0x8f7   :  { %v2412_v11 = vadd.f32 1e-05, %v2410_v16 }
 0x8f8   :  { %v2411_v18 = vadd.f32 1e-05, %v2409_v23 }
 0x8f9   :  { %3205 = vrsqrt.f32 %v2412_v11 }
 0x8fa   :  { %3207 = vrsqrt.f32 %v2411_v18 }
 0x903   :  { %v3206_v19 = vpop.eup %3205 }
 0x904   :  { %v3208_v21 = vpop.eup %3207  ;;  %v2416_v24 = vmul.f32 %v3206_v19, %v2400_v22 }
 0x905   :  { %v2415_v25 = vmul.f32 %v3208_v21, %v2399_v9 }
 0x906   :  { %v2422_v27 = vmul.f32 %v2543_v20, %v2416_v24 }
 0x907   :  { %v2421_v28 = vmul.f32 %v2543_v20, %v2415_v25 }
 0x908   :  { %v2428_v29 = vadd.f32 %v2544_v26, %v2422_v27 }
 0x909   :  { %v2427_v30 = vadd.f32 %v2544_v26, %v2421_v28 }
 0x90a   :  { %2430 = vst.msk [vmem:[#allocation2 + $0x8] sm:$0xff] %vm65_vm0, %v2428_v29 }
 0x90b   :  { %2429 = vst.msk [vmem:[#allocation2] sm:$0xff] %vm65_vm0, %v2427_v30 }
 0x90c   :  { %3220 = shalt.err (!%p3217_p4)
}
 0x90d   :  { %s3221_s15 = scalar_lea.hbm %s3692_s3, 256 }
 0x90e   :  { %p3222_p5 = scmp.ne.s32.totalorder %s3692_s3, %s3221_s15  ;;  %p3225_p6 = scmp.lt.u32.totalorder %s3221_s15, %s3692_s3 }
 0x910   :  { %p3227_p7 = pnand %p3225_p6, %p3222_p5 }
 0x912   :  { %3230 = shalt.err (!%p3227_p7)
}
 0x913   :  { %s3235_s20 = smov 128   ;;  %s3236_s21 = smov 8  }
 0x914   :  { %2442 = dma.vmem_to_hbm [thread:$0]  %s2437_s12, 256, %s3692_s3, [#allocation3], %s3235_s20, %s3235_s20, %s3236_s21  }
 0x915   :  { %3231 = dma.done.wait [#allocation3], 256  }
 0x916   :  { %3232 = vsyncadd [#allocation3], 4294967040 }
 0x917   :  { %2446 = vsyncpa [#allocation3], 1 }

</bundles_post_ra>
